<compile_context>
chip_gen: v6e
topology: v6e:2x2x1
jax: 0.10.0
libtpu: 0.0.40
codegen_flags: <defaults>
</compile_context>

<pallas_src>
import jax
import jax.numpy as jnp
from jax.experimental import pallas as pl
from jax.experimental.pallas import tpu as pltpu


LANE = 128
HALO = 128      # halo block width (lane-aligned, must be >= kernel_size - 1)


def conv1d_cube_kernel(xb_ref, xh_ref, w_ref, b_ref, o_ref):
    """Fused conv1d + bias + cube on one lane-dense output tile.

    xb_ref: (1, C_in, TL)   main input block, padded-input cols [j*TL, (j+1)*TL)
    xh_ref: (1, C_in, 128)  halo block, cols [(j+1)*TL, (j+1)*TL + 128)
    w_ref : (K, C_out, C_in) conv weight, tap-major
    b_ref : (C_out, 1)      conv bias
    o_ref : (1, C_out, TL)  output block in the final (N, C_out, L) layout
    """
    K = w_ref.shape[0]
    C_out = w_ref.shape[1]
    TL = xb_ref.shape[-1]

    xb = xb_ref[0]                                    # (C_in, TL)
    xh = xh_ref[0]                                    # (C_in, 128)
    xf = jnp.concatenate([xb, xh], axis=-1)           # (C_in, TL + 128)

    acc = jnp.zeros((C_out, TL), dtype=jnp.float32)
    for k in range(K):                                # K is static -> unrolled
        acc = acc + jnp.dot(w_ref[k], xf[:, k:k + TL],
                            preferred_element_type=jnp.float32)
    acc = acc + b_ref[...]                            # (C_out, 1) broadcast
    y = acc * acc * acc                               # x = x * x * x
    o_ref[0] = y.astype(o_ref.dtype)


def _cdiv(a, b):
    return -(-a // b)


def _round_up(a, b):
    return _cdiv(a, b) * b


def custom_conv_forward(x, weight, bias, *, padding=0, tile_l=2048):
    """x: (N, C_in, L); weight: (C_out, C_in, K); bias: (C_out,).

    Returns (N, C_out, L_out), L_out = L + 2*padding - K + 1, matching
    PyTorch nn.Conv1d followed by y = y*y*y.
    """
    N, C_in, L = x.shape
    C_out, _, K = weight.shape
    L_out = L + 2 * padding - K + 1
    assert L_out > 0, "invalid conv geometry"
    assert K - 1 <= HALO, "kernel_size must be <= 129 for the 128-wide halo"

    # ---- lane-tile width over L_out ----------------------------------------
    TL = max(LANE, min(_round_up(tile_l, LANE), _round_up(L_out, LANE)))
    # v7x has 2 TensorCores; keep >= ~8 parallel grid steps when L_out allows.
    while TL > LANE and N * _cdiv(L_out, TL) < 8:
        TL -= LANE
    # VMEM guard: keep double-buffered (input + output) tiles well under the
    # default scoped limits on v5e/v6e/v7x.  Only bites for huge channel counts.
    vmem_budget = 12 * 1024 * 1024
    per_col = 2 * 4 * (C_in + C_out)                 # double-buffered f32 in+out
    TL = min(TL, max(LANE, (vmem_budget // per_col) // LANE * LANE))

    n_tiles = _cdiv(L_out, TL)
    L_out_pad = n_tiles * TL
    L_in_ext = L_out_pad + HALO                      # last tile's halo stays in-bounds

    # Single pad: conv zero-padding on the left, zeros + alignment on the right.
    x_ext = jnp.pad(x, ((0, 0), (0, 0), (padding, L_in_ext - L - padding)))
    wt = jnp.transpose(weight, (2, 0, 1))            # (K, C_out, C_in)
    b2 = bias.reshape(C_out, 1)

    grid = (N, n_tiles)
    blocks_per_tl = TL // HALO                       # halo block-index stride

    cost = pl.CostEstimate(
        flops=int(2 * N * L_out_pad * C_out * C_in * K
                  + 3 * N * L_out_pad * C_out),
        transcendentals=0,
        bytes_accessed=int(4 * (x_ext.size + N * n_tiles * C_in * HALO
                                + wt.size + b2.size + N * C_out * L_out_pad)),
    )

    out = pl.pallas_call(
        conv1d_cube_kernel,
        out_shape=jax.ShapeDtypeStruct((N, C_out, L_out_pad), x.dtype),
        grid=grid,
        in_specs=[
            # main block: padded-input columns [j*TL, (j+1)*TL)
            pl.BlockSpec((1, C_in, TL), lambda n, j: (n, 0, j)),
            # halo block of the SAME array: columns [(j+1)*TL, (j+1)*TL + 128)
            pl.BlockSpec((1, C_in, HALO),
                         lambda n, j: (n, 0, (j + 1) * blocks_per_tl)),
            pl.BlockSpec((K, C_out, C_in), lambda n, j: (0, 0, 0)),
            pl.BlockSpec((C_out, 1), lambda n, j: (0, 0)),
        ],
        out_specs=pl.BlockSpec((1, C_out, TL), lambda n, j: (n, 0, j)),
        compiler_params=pltpu.CompilerParams(
            dimension_semantics=("parallel", "parallel")),
        cost_estimate=cost,
    )(x_ext, x_ext, wt, b2)

    # Drop lane padding (a no-op when L_out is already a multiple of 128).
    return out[:, :, :L_out]


if __name__ == "__main__":
    # Module config: in_chans=4, out_chans=8, kernel_size=3, padding=1;
    # input x is (batch=2, in_chans=4, seq=16).
    N, C_in, C_out, L, K, PAD = 2, 4, 8, 16, 3, 1

    key = jax.random.PRNGKey(0)
    kx, kw, kb = jax.random.split(key, 3)

    x = jax.random.normal(kx, (N, C_in, L), dtype=jnp.float32)
    bound = 1.0 / (C_in * K) ** 0.5
    weight = jax.random.uniform(kw, (C_out, C_in, K), minval=-bound, maxval=bound,
                                dtype=jnp.float32)
    bias = jax.random.uniform(kb, (C_out,), minval=-bound, maxval=bound,
                              dtype=jnp.float32)

    fwd = jax.jit(lambda x_, w_, b_: custom_conv_forward(x_, w_, b_, padding=PAD))
    y = jax.block_until_ready(fwd(x, weight, bias))

    # Reference: plain-JAX conv + bias + cube.
    ref = jax.lax.conv_general_dilated(
        x, weight, window_strides=(1,), padding=[(PAD, PAD)],
        dimension_numbers=('NCH', 'OIH', 'NCH'))
    ref = ref + bias.reshape(1, C_out, 1)
    ref = ref * ref * ref

    assert y.shape == (N, C_out, L + 2 * PAD - K + 1)
    assert jnp.allclose(y, ref, atol=1e-4, rtol=1e-4)

    print("KERNEL_OK")
</pallas_src>

<mosaic_0001>
module attributes {stable_mosaic.version = 11 : i64} {
  func.func @conv1d_cube_kernel(%arg0: i32, %arg1: i32, %arg2: memref<1x4x128xf32, #tpu.memory_space<vmem>>, %arg3: memref<1x4x128xf32, #tpu.memory_space<vmem>>, %arg4: memref<3x8x4xf32, #tpu.memory_space<vmem>>, %arg5: memref<8x1xf32, #tpu.memory_space<vmem>>, %arg6: memref<1x8x128xf32, #tpu.memory_space<vmem>>) attributes {dimension_semantics = [#tpu.dimension_semantics<parallel>, #tpu.dimension_semantics<parallel>], iteration_bounds = array<i64: 2, 1>, scalar_prefetch = 0 : i64, scratch_operands = 0 : i64, tpu.core_type = #tpu.core_type<tc>, window_params = [{transform_indices = @transform_0, window_bounds = array<i64: 1, 4, 128>}, {transform_indices = @transform_1, window_bounds = array<i64: 1, 4, 128>}, {pipeline_mode = #tpu.pipeline_mode<synchronous>, transform_indices = @transform_2, window_bounds = array<i64: 3, 8, 4>}, {pipeline_mode = #tpu.pipeline_mode<synchronous>, transform_indices = @transform_3, window_bounds = array<i64: 8, 1>}, {transform_indices = @transform_4, window_bounds = array<i64: 1, 8, 128>}]} {
    %c0 = arith.constant 0 : index
    %c0_0 = arith.constant 0 : index
    %c0_1 = arith.constant 0 : index
    %0 = vector.load %arg2[%c0, %c0_0, %c0_1] : memref<1x4x128xf32, #tpu.memory_space<vmem>>, vector<1x4x128xf32>
    %1 = vector.shape_cast %0 : vector<1x4x128xf32> to vector<4x128xf32>
    %c0_2 = arith.constant 0 : index
    %c0_3 = arith.constant 0 : index
    %c0_4 = arith.constant 0 : index
    %2 = vector.load %arg3[%c0_2, %c0_3, %c0_4] : memref<1x4x128xf32, #tpu.memory_space<vmem>>, vector<1x4x128xf32>
    %3 = vector.shape_cast %2 : vector<1x4x128xf32> to vector<4x128xf32>
    %4 = tpu.concatenate %1, %3 in 1 : vector<4x128xf32>, vector<4x128xf32> -> vector<4x256xf32>
    %cst = arith.constant 0.000000e+00 : f32
    %5 = vector.broadcast %cst : f32 to vector<8x128xf32>
    %c0_5 = arith.constant 0 : index
    %c0_6 = arith.constant 0 : index
    %c0_7 = arith.constant 0 : index
    %6 = vector.load %arg4[%c0_5, %c0_6, %c0_7] : memref<3x8x4xf32, #tpu.memory_space<vmem>>, vector<1x8x4xf32>
    %7 = vector.shape_cast %6 : vector<1x8x4xf32> to vector<8x4xf32>
    %8 = vector.extract_strided_slice %4 {offsets = [0, 0], sizes = [4, 128], strides = [1, 1]} : vector<4x256xf32> to vector<4x128xf32>
    %cst_8 = arith.constant dense<0.000000e+00> : vector<8x128xf32>
    %9 = tpu.matmul %7, %8, %cst_8 {dimension_numbers = #tpu.dot_dimension_numbers<[1], [0], [0], [1], [0, 0, 1, 1], [], []>} : vector<8x4xf32>, vector<4x128xf32>, vector<8x128xf32> -> vector<8x128xf32>
    %10 = arith.addf %5, %9 : vector<8x128xf32>
    %c1 = arith.constant 1 : index
    %c0_9 = arith.constant 0 : index
    %c0_10 = arith.constant 0 : index
    %11 = vector.load %arg4[%c1, %c0_9, %c0_10] : memref<3x8x4xf32, #tpu.memory_space<vmem>>, vector<1x8x4xf32>
    %12 = vector.shape_cast %11 : vector<1x8x4xf32> to vector<8x4xf32>
    %13 = vector.extract_strided_slice %4 {offsets = [0, 1], sizes = [4, 128], strides = [1, 1]} : vector<4x256xf32> to vector<4x128xf32>
    %cst_11 = arith.constant dense<0.000000e+00> : vector<8x128xf32>
    %14 = tpu.matmul %12, %13, %cst_11 {dimension_numbers = #tpu.dot_dimension_numbers<[1], [0], [0], [1], [0, 0, 1, 1], [], []>} : vector<8x4xf32>, vector<4x128xf32>, vector<8x128xf32> -> vector<8x128xf32>
    %15 = arith.addf %10, %14 : vector<8x128xf32>
    %c2 = arith.constant 2 : index
    %c0_12 = arith.constant 0 : index
    %c0_13 = arith.constant 0 : index
    %16 = vector.load %arg4[%c2, %c0_12, %c0_13] : memref<3x8x4xf32, #tpu.memory_space<vmem>>, vector<1x8x4xf32>
    %17 = vector.shape_cast %16 : vector<1x8x4xf32> to vector<8x4xf32>
    %18 = vector.extract_strided_slice %4 {offsets = [0, 2], sizes = [4, 128], strides = [1, 1]} : vector<4x256xf32> to vector<4x128xf32>
    %cst_14 = arith.constant dense<0.000000e+00> : vector<8x128xf32>
    %19 = tpu.matmul %17, %18, %cst_14 {dimension_numbers = #tpu.dot_dimension_numbers<[1], [0], [0], [1], [0, 0, 1, 1], [], []>} : vector<8x4xf32>, vector<4x128xf32>, vector<8x128xf32> -> vector<8x128xf32>
    %20 = arith.addf %15, %19 : vector<8x128xf32>
    %c0_15 = arith.constant 0 : index
    %c0_16 = arith.constant 0 : index
    %21 = vector.load %arg5[%c0_15, %c0_16] : memref<8x1xf32, #tpu.memory_space<vmem>>, vector<8x1xf32>
    %22 = vector.broadcast %21 : vector<8x1xf32> to vector<8x128xf32>
    %23 = arith.addf %20, %22 : vector<8x128xf32>
    %24 = arith.mulf %23, %23 : vector<8x128xf32>
    %25 = arith.mulf %24, %23 : vector<8x128xf32>
    %c0_17 = arith.constant 0 : index
    %c0_18 = arith.constant 0 : index
    %c0_19 = arith.constant 0 : index
    %26 = vector.load %arg6[%c0_17, %c0_18, %c0_19] : memref<1x8x128xf32, #tpu.memory_space<vmem>>, vector<1x8x128xf32>
    %27 = vector.shape_cast %26 : vector<1x8x128xf32> to vector<8x128xf32>
    %28 = vector.shape_cast %25 : vector<8x128xf32> to vector<1x8x128xf32>
    tpu.vector_store %arg6[%c0_17, %c0_18, %c0_19], %28 {strides = array<i32>} : memref<1x8x128xf32, #tpu.memory_space<vmem>>, vector<1x8x128xf32>,
    return
  }
  func.func @transform_0(%arg0: i32, %arg1: i32) -> (i32, i32, i32) {
    %c0_i32 = arith.constant 0 : i32
    %c0_i32_0 = arith.constant 0 : i32
    return %arg0, %c0_i32, %arg1 : i32, i32, i32
  }
  func.func @transform_1(%arg0: i32, %arg1: i32) -> (i32, i32, i32) {
    %c1_i32 = arith.constant 1 : i32
    %0 = arith.addi %arg1, %c1_i32 : i32
    %c1_i32_0 = arith.constant 1 : i32
    %1 = arith.muli %0, %c1_i32_0 : i32
    %c0_i32 = arith.constant 0 : i32
    %c0_i32_1 = arith.constant 0 : i32
    return %arg0, %c0_i32, %1 : i32, i32, i32
  }
  func.func @transform_2(%arg0: i32, %arg1: i32) -> (i32, i32, i32) {
    %c0_i32 = arith.constant 0 : i32
    %c0_i32_0 = arith.constant 0 : i32
    %c0_i32_1 = arith.constant 0 : i32
    %c0_i32_2 = arith.constant 0 : i32
    return %c0_i32, %c0_i32_0, %c0_i32_1 : i32, i32, i32
  }
  func.func @transform_3(%arg0: i32, %arg1: i32) -> (i32, i32) {
    %c0_i32 = arith.constant 0 : i32
    %c0_i32_0 = arith.constant 0 : i32
    %c0_i32_1 = arith.constant 0 : i32
    return %c0_i32, %c0_i32_0 : i32, i32
  }
  func.func @transform_4(%arg0: i32, %arg1: i32) -> (i32, i32, i32) {
    %c0_i32 = arith.constant 0 : i32
    %c0_i32_0 = arith.constant 0 : i32
    return %arg0, %c0_i32, %arg1 : i32, i32, i32
  }
}

</mosaic_0001>

<bundles_post_ra>
// kernel: _lambda_.1
= control target key start
LH: loop header
LB: loop body
LE: loop exit
PB: predicated region body
PF: predicated region fallthrough
CT: control target
= control target key end

     0   :  { %9 = vsyncpa [#allocation3], 0  ;;  %s965_s0 = inlined_call_operand.vmem [shape: f32[2,4,256], index: 0, kind: input, shape index: {}, may-alias: {0,1}]   ;;  %s966_s1 = inlined_call_operand.vmem [shape: f32[2,4,256], index: 1, kind: input, shape index: {}, may-alias: {0,1}]   ;;  %s967_s2 = inlined_call_operand.vmem [shape: f32[3,8,4], index: 2, kind: input, shape index: {}]   ;;  %s968_s3 = inlined_call_operand.vmem [shape: f32[8,1], index: 3, kind: input, shape index: {}]   ;;  %s969_s4 = inlined_call_operand.hbm [shape: f32[2,8,128], index: 4, kind: output, shape index: {}]  }
   0x1   :  { %11 = vsyncpa [#allocation3 + $0x1], 0  ;;  %s842_s15 = smov 0   ;;  %s844_s16 = smov 0  }
   0x2   :  { %s846_s17 = smov 0   ;;  %s848_s18 = smov 0  }
   0x3   :  { %s850_s19 = smov 0   ;;  %s852_s20 = smov 0  }
   0x4 LB: > { %s625_s21 = sadd.s32 4294967295, %s809_s20   ;;  %s626_s22 = sadd.s32 4294967294, %s809_s20   ;;  %s809_s20 = sphi %s852_s20, %s17_s20   ;;  %s805_s19 = sphi %s850_s19, %s976_s19   ;;  %s801_s18 = sphi %s848_s18, %s975_s18   ;;  %s797_s17 = sphi %s846_s17, %s974_s17   ;;  %s793_s16 = sphi %s844_s16, %s973_s16   ;;  %s789_s15 = sphi %s842_s15, %s972_s15  }
   0x5   : > { %s29_s23 = sadd.s32 1, %s805_s19  ;;  %s138_s24 = sadd.s32 1, %s797_s17 }
   0x6   : > { %p31_p0 = scmp.ge.s32.totalorder %s29_s23, 2  ;;  %p148_p1 = scmp.ne.s32.totalorder %s797_s17, %s793_s16 }
   0x7   : > { %p149_p2 = scmp.eq.s32.totalorder %s625_s21, 1  ;;  %p154_p3 = scmp.ne.s32.totalorder %s793_s16, %s789_s15 }
   0x8   : > { %s978_s23 = smov (%p31_p0, %s29_s23), 0  ;;  %p155_p5 = scmp.eq.s32.totalorder %s626_s22, 1 }
   0x9   : > { %p882_p4 = por %p149_p2, %p148_p1  ;;  %s133_s26 = ssub.s32 %s805_s19, %s978_s23 }
   0xa   : > { %p629_p6 = scmp.ge.s32.totalorder %s809_s20, 1  ;;  %p136_p7 = scmp.eq.s32.totalorder %s133_s26, 0 }
   0xb   : > { %p889_p8 = por %p155_p5, %p154_p3  ;;  %p203_p9 = scmp.lt.s32.totalorder %s809_s20, 3 }
   0xc   : > { %s895_s28 = scalar_select %p136_p7, %s797_s17, %s138_s24  }
   0xd   : > { %p204_p10 = pnand %p629_p6, %p203_p9 }
   0xe   : > { %p241_p11 = scmp.lt.s32.totalorder (!%p204_p10), %s801_s18, 1  ;;  %s814_s14 = smov (!%p204_p10), 126  }
   0xf   : > { %207 = sbr.rel (%p204_p10) target bundleno = 364 (0x16c), region = 36  ;;  %s815_s21 = smov (!%p204_p10), 127  }
  0x10   : > { %s238_s6 = sand.u32 (!%p204_p10), 1, %s793_s16   ;;  %s816_s22 = smov (!%p204_p10), [#allocation2]  }
  0x11   : > { %s737_s24 = sshll.u32 (!%p204_p10), %s816_s22, 4  ;;  %s738_s24 = int_to_ptr.vmem [resolvable:$false] %s737_s24 }
  0x14   : > { %v811_v0 = vmov 0.0   ;;  %s242_s29 = scalar_select %p241_p11, %s801_s18, 1  ;;  %vm812_vm0 = vmmov 0   ;;  %vm276_vm1 = vcmask 1043456   ;;  %v813_v1 = vmov 0   ;;  %v261_v3 = vld [vmem:[%s967_s2] sm:$0xff] }
  0x15   : > { %657 = vmatprep.subr.mxu0 %v811_v0  ;;  %662 = vmatprep.subr.mxu1 %v811_v0  ;;  %vm272_vm2 = vcmask 31744   ;;  %v508_v5 = vld [vmem:[%s968_s3] sm:$0xff]  ;;  %vm270_vm3 = vcmask 1039360   ;;  %vm430_vm4 = vcmask 1031168   ;;  %v635_v10 = vld [vmem:[%s967_s2 + $0x8] sm:$0xff]  ;;  %v640_v13 = vld [vmem:[%s967_s2 + $0x10] sm:$0xff] }
  0x16   : > { %659 = vmatprep.mubr.msk.f32.mxu0 %vm812_vm0, %v811_v0  ;;  %664 = vmatprep.mubr.msk.f32.mxu1 %vm812_vm0, %v811_v0  ;;  %s647_s30 = sshll.u32 %s242_s29, 3 }
  0x17   : > { %s248_s7 = scalar_lea.vmem %s965_s0, %s647_s30  ;;  %s649_s8 = sadd.s32 4, %s647_s30  ;;  %732 = vset.pattern.permute.xlu0 %v813_v1 }
  0x18   : > { %v259_v2 = vld [vmem:[%s248_s7] sm:$0xf]  ;;  %s257_s11 = scalar_lea.vmem %s966_s1, %s649_s8  ;;  %s630_s7 = sshll.u32 %s238_s6, 3 }
  0x19   : > { %426 = vrot.lane.b32.xlu1 %v259_v2, %s814_s14  ;;  %266 = vrot.lane.b32.xlu0 %v259_v2, %s815_s21  ;;  %v260_v4 = vld [vmem:[%s257_s11] sm:$0xf]  ;;  %s644_s8 = sshll.u32 %s801_s18, 7  ;;  %s240_s9 = scalar_lea.vmem [#allocation2], %s630_s7 }
  0x1a   : > { %663 = vmatpush3.msk.msra.mxu1 %vm276_vm1, %v259_v2  ;;  %s533_s10 = sshll.u32 %s240_s9, 4  ;;  %s531_s13 = scalar_lea.hbm %s969_s4, %s644_s8  ;;  %s534_s10 = int_to_ptr.vmem [resolvable:$true] %s533_s10 }
  0x1b   : > { %665 = vmatmul.mubr.msk.f32.vlgmr.msra.gmra.mxu1 %vm272_vm2, %v261_v3  ;;  %s739_s18 = scalar_lea.vmem %s738_s24, 256  ;;  %p740_p1 = scmp.lt.s32.totalorder %s534_s10, %s738_s24 }
  0x1d   : > { %428 = vrot.lane.b32.xlu1 %v260_v4, %s814_s14  ;;  %268 = vrot.lane.b32.xlu0 %v260_v4, %s815_s21  ;;  %s519_s14 = scalar_lea.sflag [#allocation3], %s238_s6  ;;  %s733_s21 = scalar_lea.vmem %s534_s10, 128 }
  0x1e   : > { %p734_p12 = scmp.ne.s32.totalorder %s534_s10, %s733_s21  ;;  %p741_p2 = scmp.lt.s32.totalorder %s739_s18, %s733_s21 }
  0x20   : > { %p735_p13 = pnand %p734_p12, %p882_p4  ;;  %p742_p3 = por %p741_p2, %p740_p1 }
  0x21   : > { %511 = vperm.xlu0 %732, %v508_v5  }
  0x22   : > { %p736_p0 = pneg %p735_p13 }
  0x24   : > { %p743_p5 = pnand %p742_p3, %p736_p0 }
  0x8b   : > { %v427_v6 = vpop.permute.xlu1 %426  ;;  %v267_v7 = vpop.permute.xlu0 %266 }
  0x8f   : > { %v429_v8 = vpop.permute.xlu1 %428  ;;  %v269_v9 = vpop.permute.xlu0 %268 }
  0x90   : > { %v271_v11 = vsel %vm270_vm3, %v267_v7, %v269_v9  ;;  %v431_v12 = vsel %vm430_vm4, %v427_v6, %v429_v8 }
  0x91   : > { %658 = vmatpush3.msk.msra.mxu0 %vm276_vm1, %v271_v11 }
  0x92   : > { %660 = vmatmul.mubr.msk.f32.vlgmr.msra.gmra.mxu0 %vm272_vm2, %v635_v10  ;;  %667 = vmatprep.subr.mxu0 %v811_v0 }
  0x93   : > { %668 = vmatpush3.msk.msra.mxu0 %vm276_vm1, %v431_v12  ;;  %669 = vmatprep.mubr.msk.f32.mxu0 %vm812_vm0, %v811_v0 }
  0x96   : > { %670 = vmatmul.mubr.msk.f32.vlgmr.msra.gmra.mxu0 %vm272_vm2, %v640_v13 }
  0x9c   : > { %v512_v20 = vpop.permute.xlu0 %511 }
  0xdb   : > { %v420_v14 = vpop.f32.mrf.mxu1 }
  0xdd   : > { %v666_v15 = vpop.f32.mrf.mxu1 }
 0x152   : > { %v345_v16 = vpop.f32.mrf.mxu0 }
 0x153   : > { %v421_v18 = vadd.f32 %v420_v14, %v345_v16 }
 0x154   : > { %v661_v17 = vpop.f32.mrf.mxu0 }
 0x156   : > { %v503_v19 = vpop.f32.mrf.mxu0 }
 0x157   : > { %v507_v21 = vadd.f32 %v503_v19, %v421_v18 }
 0x158   : > { %v671_v22 = vpop.f32.mrf.mxu0 }
 0x159   : > { %v514_v23 = vadd.f32 %v512_v20, %v507_v21 }
 0x15b   : > { %v515_v24 = vmul.f32 %v514_v23, %v514_v23 }
 0x15d   : > { %v516_v25 = vmul.f32 %v515_v24, %v514_v23 }
 0x15f   : > { %517 = vst [vmem:[%s240_s9] sm:$0xff] %v516_v25 }
 0x160   : > { %746 = shalt.err (!%p743_p5)
}
 0x161   : > { %s747_s26 = scalar_lea.hbm %s531_s13, 128  ;;  %s751_s5 = scalar_lea.hbm %s969_s4, 256 }
 0x162   : > { %p748_p6 = scmp.ne.s32.totalorder %s531_s13, %s747_s26  ;;  %p752_p10 = scmp.lt.s32.totalorder %s531_s13, %s969_s4 }
 0x163   : > { %p753_p11 = scmp.lt.s32.totalorder %s751_s5, %s747_s26 }
 0x164   : > { %p749_p7 = pnand %p748_p6, %p882_p4 }
 0x165   : > { %p754_p12 = por %p753_p11, %p752_p10 }
 0x166   : > { %p750_p9 = pneg %p749_p7 }
 0x168   : > { %p755_p13 = pnand %p754_p12, %p750_p9 }
 0x16a   : > { %758 = shalt.err (!%p755_p13)
}
 0x16b   : > { %672 = dma.vmem_to_hbm [thread:$0]  (%p882_p4), %s534_s10, 128, %s531_s13, %s519_s14  }
 0x16c PF: > { %p678_p0 = scmp.ge.s32.totalorder %s809_s20, 2  ;;  %s545_s8 = sand.u32 1, %s789_s15  }
 0x16d   : > { %s546_s9 = scalar_lea.sflag [#allocation3], %s545_s8 }
 0x16e   : > { %p675_p1 = pnand %p678_p0, %p889_p8 }
 0x170   : > { %p676_p2 = pneg %p675_p1 }
 0x172   : > { %784 = dma.done.wait (%p676_p2), %s546_s9, 128  }
 0x173   : > { %786 = vsyncadd (%p676_p2), %s546_s9, 4294967168  ;;  %s17_s20 = sadd.s32 1, %s809_s20   ;;  %s972_s15 = smov %s793_s16 }
 0x174   : > { %p14_p3 = scmp.ge.s32.totalorder %s17_s20, 4   ;;  %s973_s16 = smov %s797_s17 }
 0x175   : > { %s974_s17 = smov %s895_s28  ;;  %s975_s18 = smov %s805_s19 }
 0x176   : > { %s976_s19 = smov %s978_s23  ;;  %16 = sbr.rel (!%p14_p3) target bundleno = 4 (0x4), region = 76 }
 0x17b   :  { %551 = vsyncpa [#allocation3], 1 }
 0x17c   :  { %553 = vsyncpa [#allocation3 + $0x1], 1 }

</bundles_post_ra>
